<compile_context>
chip_gen: v7x
topology: tpu7x:2x2x1
jax: 0.10.0
libtpu: 0.0.40
codegen_flags: <defaults>
</compile_context>

<pallas_src>
import functools
import math

import jax
import jax.numpy as jnp
from jax import lax
from jax.experimental import pallas as pl
from jax.experimental.pallas import tpu as pltpu


def _be_attention_kernel(x_ref, wq_ref, bq_ref, wkv_ref, bkv_ref, o_ref,
                         k_scr, v_scr, *, mxu_dtype):
    """One (batch, query-tile) grid step.

    x_ref    : (1, S, H)   current batch element (block constant across q-tile axis)
    wq_ref   : (H, H)      Q projection weight (grid-invariant, single-buffered)
    bq_ref   : (1, H)      Q projection bias
    wkv_ref  : (H, 2H)     fused [Wk | Wv]
    bkv_ref  : (1, 2H)     fused [bk | bv]
    o_ref    : (1, TQ, H)  output tile
    k_scr    : (S, H)      resident K for the whole sequence (mxu_dtype scratch)
    v_scr    : (S, H)      resident V for the whole sequence (mxu_dtype scratch)
    """
    h = x_ref.shape[-1]
    tq = o_ref.shape[1]
    inv_scale = 1.0 / math.sqrt(float(h))
    qi = pl.program_id(1)

    # Fused K/V projection for the whole sequence, once per batch element
    # (the q-tile axis is the inner, sequential grid dimension).
    @pl.when(qi == 0)
    def _():
        x_all = x_ref[0].astype(mxu_dtype)                               # (S, H)
        kv = (jnp.dot(x_all, wkv_ref[...].astype(mxu_dtype),
                      preferred_element_type=jnp.float32)
              + bkv_ref[...])                                            # (S, 2H) f32 acc
        k_scr[...] = kv[:, :h].astype(k_scr.dtype)
        v_scr[...] = kv[:, h:].astype(v_scr.dtype)

    # Per-tile Q projection: spreads ~1/3 of the projection FLOPs evenly across grid
    # steps instead of serializing the whole QKV projection into the qi == 0 step.
    row0 = pl.multiple_of(qi * tq, tq)
    x_tile = x_ref[0, pl.ds(row0, tq), :]                                # (TQ, H)
    q = (jnp.dot(x_tile.astype(mxu_dtype), wq_ref[...].astype(mxu_dtype),
                 preferred_element_type=jnp.float32)
         + bq_ref[...]) * inv_scale                                      # (TQ, H) f32

    # scores = Q K^T: contract the H axis of both operands on the MXU (no materialized K^T).
    scores = lax.dot_general(
        q.astype(mxu_dtype), k_scr[...],
        dimension_numbers=(((1,), (1,)), ((), ())),
        preferred_element_type=jnp.float32,
    )                                                                    # (TQ, S)

    # Numerically stable softmax over the key axis; normalization is applied AFTER the
    # P@V matmul (TQ*H multiplies instead of TQ*S) with an exact f32 reciprocal.
    scores = scores - jnp.max(scores, axis=-1, keepdims=True)
    p = jnp.exp(scores)                                                  # values in (0, 1]
    l = jnp.sum(p, axis=-1, keepdims=True)                               # (TQ, 1)

    out = jnp.dot(p.astype(mxu_dtype), v_scr[...],
                  preferred_element_type=jnp.float32)                    # (TQ, H)
    o_ref[0] = (out * (1.0 / l)).astype(o_ref.dtype)


def _pick_query_tile(s):
    # Prefer 256 (fills the 2x256x256 MXU on v6e/v7x; still reasonable on v5e), then
    # smaller tiles that divide S; otherwise run the whole sequence as one tile.
    if s <= 256:
        return s
    for tq in (256, 128, 64, 32, 16, 8):
        if s % tq == 0:
            return tq
    return s


def _vmem_limit_bytes(S, H, tq, scratch_itemsize):
    """Working-set estimate (+25% headroom). Never claims full physical VMEM (64 MiB on v7x)."""
    f32 = 4
    est = (2 * S * H * f32                  # double-buffered x block
           + (3 * H * H + 3 * H) * f32      # single-buffered weights / biases
           + 2 * tq * H * f32               # double-buffered output block
           + 2 * S * H * scratch_itemsize   # resident K / V scratch
           + 2 * tq * S * f32               # scores / probability temporaries
           + S * 2 * H * f32                # qi == 0 KV-projection intermediate
           + tq * H * f32)                  # q tile
    est = int(est * 1.25)
    if est <= 32 * 1024 * 1024:             # default scoped limit already suffices
        return None
    return min(est, 48 * 1024 * 1024)       # headroom below v7x's 64 MiB physical VMEM


def be_attention(x, wq, bq, wkv, bkv, *, tq=None, mxu_dtype=jnp.bfloat16):
    """x: (B, S, H). wq: (H, H), bq: (1, H), wkv: (H, 2H), bkv: (1, 2H), all laid out (in, out).

    mxu_dtype: matmul operand dtype (accumulation is always f32).  bfloat16 (default)
    feeds the MXU natively and halves the resident K/V scratch; float32 gives tight
    parity with the f32 PyTorch semantics.
    """
    B, S, H = x.shape
    assert wq.shape == (H, H) and bq.shape == (1, H)
    assert wkv.shape == (H, 2 * H) and bkv.shape == (1, 2 * H)
    if tq is None:
        tq = _pick_query_tile(S)
    assert S % tq == 0, f"query tile {tq} must divide sequence length {S}"

    mxu_dtype = jnp.dtype(mxu_dtype)
    scratch_dtype = mxu_dtype                      # K/V live in the MXU operand dtype
    # Grid-invariant blocks: single-buffer them (second pipeline buffer is pure waste).
    resident = dict(pipeline_mode=pl.Buffered(1))

    kernel = functools.partial(_be_attention_kernel, mxu_dtype=mxu_dtype)

    return pl.pallas_call(
        kernel,
        out_shape=jax.ShapeDtypeStruct((B, S, H), x.dtype),
        grid_spec=pltpu.PrefetchScalarGridSpec(
            num_scalar_prefetch=0,
            grid=(B, S // tq),
            in_specs=[
                # x: full sequence of the current batch element; block index constant
                # across the q-tile axis, so it is fetched once per batch element.
                pl.BlockSpec((1, S, H), lambda b, qi: (b, 0, 0)),
                pl.BlockSpec((H, H), lambda b, qi: (0, 0), **resident),
                pl.BlockSpec((1, H), lambda b, qi: (0, 0), **resident),
                pl.BlockSpec((H, 2 * H), lambda b, qi: (0, 0), **resident),
                pl.BlockSpec((1, 2 * H), lambda b, qi: (0, 0), **resident),
            ],
            out_specs=pl.BlockSpec((1, tq, H), lambda b, qi: (b, qi, 0)),
            scratch_shapes=[
                pltpu.VMEM((S, H), scratch_dtype),   # K (resident per batch element)
                pltpu.VMEM((S, H), scratch_dtype),   # V
            ],
        ),
        compiler_params=pltpu.CompilerParams(
            # Batch is independent (megacore-shardable); the q-tile axis carries the
            # resident K/V scratch so it must stay sequential.
            dimension_semantics=("parallel", "arbitrary"),
            vmem_limit_bytes=_vmem_limit_bytes(S, H, tq, scratch_dtype.itemsize),
        ),
    )(x, wq, bq, wkv, bkv)


def fuse_kv_params(wk, bk, wv, bv):
    """One-time (parameter-setup) fusion of the K and V projections."""
    return jnp.concatenate([wk, wv], axis=1), jnp.concatenate([bk, bv], axis=1)


def reference(x, wq, bq, wk, bk, wv, bv):
    """Pure-JAX reference mirroring the PyTorch forward (full f32 matmul precision)."""
    H = x.shape[-1]
    hi = lax.Precision.HIGHEST
    q = jnp.einsum("bsh,hd->bsd", x, wq, precision=hi) + bq
    k = jnp.einsum("bsh,hd->bsd", x, wk, precision=hi) + bk
    v = jnp.einsum("bsh,hd->bsd", x, wv, precision=hi) + bv
    scores = jnp.einsum("bsh,bth->bst", q, k, precision=hi) / jnp.sqrt(jnp.float32(H))
    attn = jax.nn.softmax(scores, axis=-1)
    return jnp.einsum("bst,bth->bsh", attn, v, precision=hi)


def make_params(key, H):
    """torch.nn.Linear-style init; weights stored as (H_in, H_out) = torch W^T."""
    kq, kbq, kk, kbk, kv, kbv = jax.random.split(key, 6)
    bound = 1.0 / math.sqrt(H)
    u = lambda k, shape: jax.random.uniform(
        k, shape, minval=-bound, maxval=bound, dtype=jnp.float32)
    return (u(kq, (H, H)), u(kbq, (1, H)),
            u(kk, (H, H)), u(kbk, (1, H)),
            u(kv, (H, H)), u(kbv, (1, H)))


def _run_case(key, B, S, H, *, mxu_dtype, atol, rtol, tq=None):
    kx, kp = jax.random.split(key)
    x = jax.random.normal(kx, (B, S, H), dtype=jnp.float32)
    wq, bq, wk, bk, wv, bv = make_params(kp, H)
    wkv, bkv = fuse_kv_params(wk, bk, wv, bv)   # fused once at parameter-setup time
    out = jax.block_until_ready(
        be_attention(x, wq, bq, wkv, bkv, tq=tq, mxu_dtype=mxu_dtype))
    ref = reference(x, wq, bq, wk, bk, wv, bv)
    assert out.shape == (B, S, H)
    err = float(jnp.max(jnp.abs(out - ref)))
    assert jnp.allclose(out, ref, atol=atol, rtol=rtol), (
        f"mismatch vs reference (mxu_dtype={mxu_dtype}): max abs err {err}")


if __name__ == "__main__":
    key = jax.random.PRNGKey(0)
    k0, k1, k2, k3 = jax.random.split(key, 4)

    # Small shape from the module's toy config, full-f32 path: tight parity.
    _run_case(k0, B=2, S=8, H=32, mxu_dtype=jnp.float32, atol=5e-4, rtol=5e-4)
    # Same shape with bf16 MXU operands (f32 accumulation): relaxed tolerance.
    _run_case(k1, B=2, S=8, H=32, mxu_dtype=jnp.bfloat16, atol=2e-2, rtol=2e-2)
    # Lane-aligned shape exercising the multi-q-tile path (resident K/V + per-tile Q), f32.
    _run_case(k2, B=2, S=256, H=128, mxu_dtype=jnp.float32, tq=64, atol=5e-4, rtol=5e-4)
    # Same shape on the default fast path (bf16 MXU operands, TQ=256).
    _run_case(k3, B=2, S=256, H=128, mxu_dtype=jnp.bfloat16, atol=2e-2, rtol=2e-2)

    print("KERNEL_OK")
</pallas_src>

<mosaic_0001>
module attributes {stable_mosaic.version = 11 : i64} {
  func.func @_be_attention_kernel(%arg0: i32, %arg1: i32, %arg2: memref<1x8x32xf32, #tpu.memory_space<vmem>>, %arg3: memref<32x32xf32, #tpu.memory_space<vmem>>, %arg4: memref<1x32xf32, #tpu.memory_space<vmem>>, %arg5: memref<32x64xf32, #tpu.memory_space<vmem>>, %arg6: memref<1x64xf32, #tpu.memory_space<vmem>>, %arg7: memref<1x8x32xf32, #tpu.memory_space<vmem>>, %arg8: memref<8x32xf32, #tpu.memory_space<vmem>>, %arg9: memref<8x32xf32, #tpu.memory_space<vmem>>) attributes {dimension_semantics = [#tpu.dimension_semantics<parallel>, #tpu.dimension_semantics<arbitrary>], iteration_bounds = array<i64: 2, 1>, scalar_prefetch = 0 : i64, scratch_operands = 2 : i64, tpu.core_type = #tpu.core_type<tc>, window_params = [{transform_indices = @transform_0, window_bounds = array<i64: 1, 8, 32>}, {pipeline_mode = #tpu.pipeline_mode<synchronous>, transform_indices = @transform_1, window_bounds = array<i64: 32, 32>}, {pipeline_mode = #tpu.pipeline_mode<synchronous>, transform_indices = @transform_2, window_bounds = array<i64: 1, 32>}, {pipeline_mode = #tpu.pipeline_mode<synchronous>, transform_indices = @transform_3, window_bounds = array<i64: 32, 64>}, {pipeline_mode = #tpu.pipeline_mode<synchronous>, transform_indices = @transform_4, window_bounds = array<i64: 1, 64>}, {transform_indices = @transform_5, window_bounds = array<i64: 1, 8, 32>}]} {
    %c0_i32 = arith.constant 0 : i32
    %0 = arith.cmpi eq, %arg1, %c0_i32 : i32
    %1 = arith.extui %0 : i1 to i32
    %c0_i32_0 = arith.constant 0 : i32
    %2 = arith.cmpi ne, %1, %c0_i32_0 : i32
    scf.if %2 {
      %c0_19 = arith.constant 0 : index
      %c0_20 = arith.constant 0 : index
      %c0_21 = arith.constant 0 : index
      %33 = vector.load %arg2[%c0_19, %c0_20, %c0_21] : memref<1x8x32xf32, #tpu.memory_space<vmem>>, vector<1x8x32xf32>
      %34 = vector.shape_cast %33 : vector<1x8x32xf32> to vector<8x32xf32>
      %c0_22 = arith.constant 0 : index
      %c0_23 = arith.constant 0 : index
      %35 = vector.load %arg5[%c0_22, %c0_23] : memref<32x64xf32, #tpu.memory_space<vmem>>, vector<32x64xf32>
      %cst_24 = arith.constant dense<0.000000e+00> : vector<8x64xf32>
      %36 = tpu.matmul %34, %35, %cst_24 {dimension_numbers = #tpu.dot_dimension_numbers<[1], [0], [0], [1], [0, 0, 1, 1], [], []>} : vector<8x32xf32>, vector<32x64xf32>, vector<8x64xf32> -> vector<8x64xf32>
      %c0_25 = arith.constant 0 : index
      %c0_26 = arith.constant 0 : index
      %37 = vector.load %arg6[%c0_25, %c0_26] : memref<1x64xf32, #tpu.memory_space<vmem>>, vector<1x64xf32>
      %38 = vector.broadcast %37 : vector<1x64xf32> to vector<8x64xf32>
      %39 = arith.addf %36, %38 : vector<8x64xf32>
      %40 = vector.extract_strided_slice %39 {offsets = [0, 0], sizes = [8, 32], strides = [1, 1]} : vector<8x64xf32> to vector<8x32xf32>
      %c0_27 = arith.constant 0 : index
      %c0_28 = arith.constant 0 : index
      %41 = vector.load %arg8[%c0_27, %c0_28] : memref<8x32xf32, #tpu.memory_space<vmem>>, vector<8x32xf32>
      tpu.vector_store %arg8[%c0_27, %c0_28], %40 {strides = array<i32>} : memref<8x32xf32, #tpu.memory_space<vmem>>, vector<8x32xf32>,
      %42 = vector.extract_strided_slice %39 {offsets = [0, 32], sizes = [8, 32], strides = [1, 1]} : vector<8x64xf32> to vector<8x32xf32>
      %c0_29 = arith.constant 0 : index
      %c0_30 = arith.constant 0 : index
      %43 = vector.load %arg9[%c0_29, %c0_30] : memref<8x32xf32, #tpu.memory_space<vmem>>, vector<8x32xf32>
      tpu.vector_store %arg9[%c0_29, %c0_30], %42 {strides = array<i32>} : memref<8x32xf32, #tpu.memory_space<vmem>>, vector<8x32xf32>,
    } else {
    }
    %c8_i32 = arith.constant 8 : i32
    %3 = arith.muli %arg1, %c8_i32 : i32
    %4 = tpu.assume_multiple %3, 8 : i32
    %c0 = arith.constant 0 : index
    %5 = arith.index_cast %4 : i32 to index
    %c0_1 = arith.constant 0 : index
    %6 = vector.load %arg2[%c0, %5, %c0_1] : memref<1x8x32xf32, #tpu.memory_space<vmem>>, vector<1x8x32xf32>
    %7 = vector.shape_cast %6 : vector<1x8x32xf32> to vector<8x32xf32>
    %c0_2 = arith.constant 0 : index
    %c0_3 = arith.constant 0 : index
    %8 = vector.load %arg3[%c0_2, %c0_3] : memref<32x32xf32, #tpu.memory_space<vmem>>, vector<32x32xf32>
    %cst = arith.constant dense<0.000000e+00> : vector<8x32xf32>
    %9 = tpu.matmul %7, %8, %cst {dimension_numbers = #tpu.dot_dimension_numbers<[1], [0], [0], [1], [0, 0, 1, 1], [], []>} : vector<8x32xf32>, vector<32x32xf32>, vector<8x32xf32> -> vector<8x32xf32>
    %c0_4 = arith.constant 0 : index
    %c0_5 = arith.constant 0 : index
    %10 = vector.load %arg4[%c0_4, %c0_5] : memref<1x32xf32, #tpu.memory_space<vmem>>, vector<1x32xf32>
    %11 = vector.broadcast %10 : vector<1x32xf32> to vector<8x32xf32>
    %12 = arith.addf %9, %11 : vector<8x32xf32>
    %cst_6 = arith.constant 0.176776692 : f32
    %13 = vector.broadcast %cst_6 : f32 to vector<8x32xf32>
    %14 = arith.mulf %12, %13 : vector<8x32xf32>
    %c0_7 = arith.constant 0 : index
    %c0_8 = arith.constant 0 : index
    %15 = vector.load %arg8[%c0_7, %c0_8] : memref<8x32xf32, #tpu.memory_space<vmem>>, vector<8x32xf32>
    %cst_9 = arith.constant dense<0.000000e+00> : vector<8x8xf32>
    %16 = tpu.matmul %14, %15, %cst_9 {dimension_numbers = #tpu.dot_dimension_numbers<[1], [1], [0], [0], [0, 0, 1, 0], [], []>} : vector<8x32xf32>, vector<8x32xf32>, vector<8x8xf32> -> vector<8x8xf32>
    %cst_10 = arith.constant dense<0xFF800000> : vector<8xf32>
    %17 = vector.multi_reduction <maximumf>, %16, %cst_10 [1] : vector<8x8xf32> to vector<8xf32>
    %18 = vector.shape_cast %17 : vector<8xf32> to vector<8x1xf32>
    %19 = vector.broadcast %18 : vector<8x1xf32> to vector<8x8xf32>
    %20 = arith.subf %16, %19 : vector<8x8xf32>
    %21 = math.exp %20 : vector<8x8xf32>
    %cst_11 = arith.constant dense<0.000000e+00> : vector<8xf32>
    %22 = vector.multi_reduction <add>, %21, %cst_11 [1] : vector<8x8xf32> to vector<8xf32>
    %23 = vector.shape_cast %22 : vector<8xf32> to vector<8x1xf32>
    %c0_12 = arith.constant 0 : index
    %c0_13 = arith.constant 0 : index
    %24 = vector.load %arg9[%c0_12, %c0_13] : memref<8x32xf32, #tpu.memory_space<vmem>>, vector<8x32xf32>
    %cst_14 = arith.constant dense<0.000000e+00> : vector<8x32xf32>
    %25 = tpu.matmul %21, %24, %cst_14 {dimension_numbers = #tpu.dot_dimension_numbers<[1], [0], [0], [1], [0, 0, 1, 1], [], []>} : vector<8x8xf32>, vector<8x32xf32>, vector<8x32xf32> -> vector<8x32xf32>
    %cst_15 = arith.constant 1.000000e+00 : f32
    %26 = vector.broadcast %cst_15 : f32 to vector<8x1xf32>
    %27 = arith.divf %26, %23 : vector<8x1xf32>
    %28 = vector.broadcast %27 : vector<8x1xf32> to vector<8x32xf32>
    %29 = arith.mulf %25, %28 : vector<8x32xf32>
    %c0_16 = arith.constant 0 : index
    %c0_17 = arith.constant 0 : index
    %c0_18 = arith.constant 0 : index
    %30 = vector.load %arg7[%c0_16, %c0_17, %c0_18] : memref<1x8x32xf32, #tpu.memory_space<vmem>>, vector<1x8x32xf32>
    %31 = vector.shape_cast %30 : vector<1x8x32xf32> to vector<8x32xf32>
    %32 = vector.shape_cast %29 : vector<8x32xf32> to vector<1x8x32xf32>
    tpu.vector_store %arg7[%c0_16, %c0_17, %c0_18], %32 {strides = array<i32>} : memref<1x8x32xf32, #tpu.memory_space<vmem>>, vector<1x8x32xf32>,
    return
  }
  func.func @transform_0(%arg0: i32, %arg1: i32) -> (i32, i32, i32) {
    %c0_i32 = arith.constant 0 : i32
    %c0_i32_0 = arith.constant 0 : i32
    %c0_i32_1 = arith.constant 0 : i32
    return %arg0, %c0_i32, %c0_i32_0 : i32, i32, i32
  }
  func.func @transform_1(%arg0: i32, %arg1: i32) -> (i32, i32) {
    %c0_i32 = arith.constant 0 : i32
    %c0_i32_0 = arith.constant 0 : i32
    %c0_i32_1 = arith.constant 0 : i32
    return %c0_i32, %c0_i32_0 : i32, i32
  }
  func.func @transform_2(%arg0: i32, %arg1: i32) -> (i32, i32) {
    %c0_i32 = arith.constant 0 : i32
    %c0_i32_0 = arith.constant 0 : i32
    %c0_i32_1 = arith.constant 0 : i32
    return %c0_i32, %c0_i32_0 : i32, i32
  }
  func.func @transform_3(%arg0: i32, %arg1: i32) -> (i32, i32) {
    %c0_i32 = arith.constant 0 : i32
    %c0_i32_0 = arith.constant 0 : i32
    %c0_i32_1 = arith.constant 0 : i32
    return %c0_i32, %c0_i32_0 : i32, i32
  }
  func.func @transform_4(%arg0: i32, %arg1: i32) -> (i32, i32) {
    %c0_i32 = arith.constant 0 : i32
    %c0_i32_0 = arith.constant 0 : i32
    %c0_i32_1 = arith.constant 0 : i32
    return %c0_i32, %c0_i32_0 : i32, i32
  }
  func.func @transform_5(%arg0: i32, %arg1: i32) -> (i32, i32, i32) {
    %c0_i32 = arith.constant 0 : i32
    %c0_i32_0 = arith.constant 0 : i32
    return %arg0, %arg1, %c0_i32 : i32, i32, i32
  }
}

</mosaic_0001>

<bundles_post_ra>
// kernel: tpu_custom_call.1
= control target key start
LH: loop header
LB: loop body
LE: loop exit
PB: predicated region body
PF: predicated region fallthrough
CT: control target
= control target key end

     0   :  { %10 = vsyncpa [#allocation5], 0  ;;  %s1411_s0 = inlined_call_operand.hbm [shape: f32[2,8,32], index: 0, kind: input, shape index: {}]   ;;  %s1412_s1 = inlined_call_operand.hbm [shape: f32[32,32], index: 1, kind: input, shape index: {}]   ;;  %s1413_s2 = inlined_call_operand.vmem [shape: f32[1,32], index: 2, kind: input, shape index: {}]   ;;  %s1414_s3 = inlined_call_operand.hbm [shape: f32[32,64], index: 3, kind: input, shape index: {}]   ;;  %s1415_s4 = inlined_call_operand.vmem [shape: f32[1,64], index: 4, kind: input, shape index: {}]   ;;  %s1416_s5 = inlined_call_operand.hbm [shape: f32[2,8,32], index: 5, kind: output, shape index: {}]  }
   0x1   :  { %12 = vsyncpa [#allocation5 + $0x1], 0 }
   0x2   :  { %13 = vsyncpa [#allocation8], 0 }
   0x3   :  { %14 = vsyncpa [#allocation6], 0 }
   0x4   :  { %16 = vsyncpa [#allocation6 + $0x1], 0  ;;  %s1137_s18 = smov 0   ;;  %s1139_s19 = smov 0  }
   0x5   :  { %s1141_s20 = smov 0   ;;  %s1143_s21 = smov 0  }
   0x6   :  { %s1145_s22 = smov 0   ;;  %s1147_s23 = smov 0  }
   0x7 LB: > { %s748_s24 = sadd.s32 4294967295, %s1095_s23   ;;  %s749_s25 = sadd.s32 4294967294, %s1095_s23   ;;  %s1095_s23 = sphi %s1147_s23, %s22_s23   ;;  %s1091_s22 = sphi %s1145_s22, %s1438_s22   ;;  %s1087_s21 = sphi %s1143_s21, %s1437_s21   ;;  %s1083_s20 = sphi %s1141_s20, %s1436_s20   ;;  %s1079_s19 = sphi %s1139_s19, %s1435_s19   ;;  %s1075_s18 = sphi %s1137_s18, %s1434_s18  }
   0x8   : > { %p54_p0 = scmp.ne.s32.totalorder %s1079_s19, %s1075_s18  ;;  %p1171_p1 = scmp.eq.s32.totalorder %s748_s24, 0 }
   0x9   : > { %p1175_p2 = scmp.eq.s32.totalorder %s748_s24, 1  ;;  %p170_p3 = scmp.eq.s32.totalorder %s749_s25, 1 }
   0xa   : > { %s1421_s26 = scalar_select %p1171_p1, 1, 0 }
   0xb   : > { %p1181_p4 = por %p1171_p1, %p54_p0  ;;  %p750_p5 = scmp.ge.s32.totalorder %s1095_s23, 1 }
   0xc   : > { %p1186_p6 = por %p170_p3, %p54_p0  ;;  %p177_p7 = scmp.lt.s32.totalorder %s1095_s23, 3 }
   0xd   : > { %s1423_s28 = scalar_select %p1181_p4, 1, 0 }
   0xe   : > { %s1424_s29 = scalar_select %p1186_p6, 1, 0 }
   0xf   : > { %p1191_p8 = pnand %p750_p5, %p177_p7  ;;  %s1097_s6 = smov [#allocation7]  }
  0x10   : > { %s189_s7 = sshll.u32 %s1097_s6, 4  ;;  %s1098_s9 = smov [#allocation9]   ;;  %s1195_s7 = int_to_ptr.vmem [resolvable:$true] %s189_s7 }
  0x11   : > { %p842_p9 = pneg %p1191_p8  ;;  %s205_s10 = sshll.u32 %s1098_s9, 4  ;;  %s1206_s10 = int_to_ptr.vmem [resolvable:$true] %s205_s10 }
  0x12   : > { %s923_s13 = scalar_lea.hbm %s1412_s1, 512 }
  0x13   : > { %p1202_p11 = pnand %p842_p9, %p1171_p1  ;;  %p924_p12 = scmp.ne.s32.totalorder %s1412_s1, %s923_s13 }
  0x14   : > { %p930_p5 = scmp.lt.u32.totalorder %s923_s13, %s1412_s1 }
  0x15   : > { %p925_p13 = pneg %p1202_p11 }
  0x17   : > { %p926_p0 = pnand %p925_p13, %p924_p12 }
  0x19   : > { %p927_p3 = pneg %p926_p0 }
  0x1b   : > { %p932_p7 = pnand %p930_p5, %p927_p3 }
  0x1d   : > { %935 = shalt.err (!%p932_p7)
}
  0x1e   : > { %s936_s24 = scalar_lea.vmem %s1195_s7, 512  ;;  %p944_p1 = scmp.lt.s32.totalorder %s1195_s7, %s1195_s7 }
  0x1f   : > { %p937_p9 = scmp.ne.s32.totalorder %s1195_s7, %s936_s24  ;;  %p945_p12 = scmp.lt.s32.totalorder %s936_s24, %s936_s24 }
  0x21   : > { %p939_p10 = pnand %p937_p9, %p925_p13  ;;  %p946_p0 = por %p945_p12, %p944_p1 }
  0x23   : > { %p940_p6 = pneg %p939_p10 }
  0x25   : > { %p947_p4 = pnand %p946_p0, %p940_p6 }
  0x27   : > { %950 = shalt.err (!%p947_p4)
}
  0x28   : > { %s1099_s25 = smov 128   ;;  %s1100_s6 = smov 8  }
  0x29   : > { %845 = dma.hbm_to_vmem [thread:$0]  (!%p1202_p11), %s1412_s1, 512, %s1195_s7, [#allocation8], %s1099_s25, %s1099_s25, %s1100_s6  }
  0x2a   : > { %s951_s14 = scalar_lea.hbm %s1414_s3, 512 }
  0x2b   : > { %p952_p1 = scmp.ne.s32.totalorder %s1414_s3, %s951_s14  ;;  %p958_p10 = scmp.lt.u32.totalorder %s951_s14, %s1414_s3 }
  0x2d   : > { %p954_p4 = pnand %p952_p1, %p925_p13 }
  0x2f   : > { %p955_p6 = pneg %p954_p4 }
  0x31   : > { %p960_p3 = pnand %p958_p10, %p955_p6 }
  0x33   : > { %963 = shalt.err (!%p960_p3)
}
  0x34   : > { %s964_s7 = scalar_lea.vmem %s1206_s10, 512  ;;  %p972_p12 = scmp.lt.s32.totalorder %s1206_s10, %s1206_s10 }
  0x35   : > { %p965_p5 = scmp.ne.s32.totalorder %s1206_s10, %s964_s7  ;;  %p973_p0 = scmp.lt.s32.totalorder %s964_s7, %s964_s7 }
  0x37   : > { %p967_p7 = pnand %p965_p5, %p925_p13  ;;  %p974_p1 = por %p973_p0, %p972_p12 }
  0x39   : > { %p968_p9 = pneg %p967_p7 }
  0x3b   : > { %p975_p4 = pnand %p974_p1, %p968_p9 }
  0x3d   : > { %978 = shalt.err (!%p975_p4)
}
  0x3e   : > { %848 = dma.hbm_to_vmem [thread:$0]  (!%p1202_p11), %s1414_s3, 512, %s1206_s10, [#allocation8], %s1099_s25, %s1099_s25, %s1100_s6  }
  0x3f   : > { %s34_s12 = sadd.s32 1, %s1091_s22  ;;  %s41_s13 = sadd.s32 1, %s1083_s20 }
  0x40   : > { %p36_p13 = scmp.ge.s32.totalorder %s34_s12, 2  ;;  %p48_p6 = scmp.ne.s32.totalorder %s1083_s20, %s1079_s19 }
  0x41   : > { %p49_p10 = scmp.eq.s32.totalorder %s1095_s23, 0  ;;  %p859_p3 = scmp.lt.s32.totalorder %s1095_s23, 2 }
  0x42   : > { %s1440_s12 = smov (%p36_p13, %s34_s12), 0  ;;  %p1270_p7 = por %p1175_p2, %p48_p6 }
  0x43   : > { %p50_p5 = por %p49_p10, %p48_p6  ;;  %s38_s14 = ssub.s32 %s1091_s22, %s1440_s12 }
  0x44   : > { %s1427_s8 = scalar_select %p1270_p7, 1, 0 }
  0x45   : > { %s222_s15 = sand.u32 1, %s1083_s20   ;;  %p39_p9 = scmp.eq.s32.totalorder %s38_s14, 0 }
  0x46   : > { %s754_s10 = sshll.u32 %s222_s15, 3  ;;  %s755_s25 = sshll.u32 %s1091_s22, 7 }
  0x47   : > { %s1279_s6 = scalar_select %p39_p9, %s1083_s20, %s41_s13  }
  0x48   : > { %s1284_s24 = scalar_lea.hbm %s1411_s0, %s755_s25  ;;  %s226_s27 = scalar_lea.vmem [#allocation4], %s754_s10 }
  0x49   : > { %s233_s7 = sshll.u32 %s226_s27, 4  ;;  %p1288_p2 = pnand %p859_p3, %p50_p5  ;;  %s1292_s7 = int_to_ptr.vmem [resolvable:$true] %s233_s7 }
  0x4a   : > { %s223_s11 = scalar_lea.sflag [#allocation5], %s222_s15  ;;  %s979_s13 = scalar_lea.hbm %s1284_s24, 128 }
  0x4b   : > { %p980_p11 = scmp.ne.s32.totalorder %s1284_s24, %s979_s13  ;;  %p981_p12 = pneg %p1288_p2 }
  0x4c   : > { %s984_s25 = scalar_lea.hbm %s1411_s0, 256  ;;  %p985_p4 = scmp.lt.u32.totalorder %s1284_s24, %s1411_s0 }
  0x4d   : > { %p982_p0 = pnand %p981_p12, %p980_p11  ;;  %p986_p13 = scmp.lt.u32.totalorder %s984_s25, %s979_s13 }
  0x4e   : > { %p988_p10 = scmp.lt.u32.totalorder %s979_s13, %s1284_s24 }
  0x4f   : > { %p983_p1 = pneg %p982_p0  ;;  %p987_p6 = por %p986_p13, %p985_p4 }
  0x51   : > { %p989_p3 = por %p988_p10, %p987_p6 }
  0x53   : > { %p990_p5 = pnand %p989_p3, %p983_p1 }
  0x55   : > { %993 = shalt.err (!%p990_p5)
}
  0x56   : > { %s994_s15 = scalar_lea.vmem %s1292_s7, 128  ;;  %s1101_s27 = smov [#allocation4]  }
  0x57   : > { %p995_p9 = scmp.ne.s32.totalorder %s1292_s7, %s994_s15  ;;  %s999_s14 = sshll.u32 %s1101_s27, 4  ;;  %s1000_s14 = int_to_ptr.vmem [resolvable:$false] %s999_s14 }
  0x58   : > { %s1001_s10 = scalar_lea.vmem %s1000_s14, 256  ;;  %p1002_p7 = scmp.lt.s32.totalorder %s1292_s7, %s1000_s14 }
  0x59   : > { %p997_p11 = pnand %p995_p9, %p981_p12  ;;  %p1003_p4 = scmp.lt.s32.totalorder %s1001_s10, %s994_s15 }
  0x5b   : > { %p998_p0 = pneg %p997_p11  ;;  %p1004_p13 = por %p1003_p4, %p1002_p7 }
  0x5d   : > { %p1005_p6 = pnand %p1004_p13, %p998_p0 }
  0x5f   : > { %1008 = shalt.err (!%p1005_p6)
}
  0x60   : > { %852 = dma.hbm_to_vmem [thread:$0]  (!%p1288_p2), %s1284_s24, 128, %s1292_s7, %s223_s11  }
  0x61   : > { %242 = sbr.rel (%p1191_p8) target bundleno = 942 (0x3ae), region = 40  ;;  %s1322_s13 = sand.u32 (!%p1191_p8), 1, %s1079_s19  }
  0x62   : > { %s757_s25 = sshll.u32 (!%p1191_p8), %s1322_s13, 3  ;;  %s245_s16 = scalar_lea.sflag (!%p1191_p8), [#allocation5], %s1322_s13 }
  0x63   : > { %s248_s17 = scalar_lea.vmem (!%p1191_p8), [#allocation4], %s757_s25  ;;  %p1429_p7 = scmp.ne.s32.totalorder (!%p1191_p8), %s1423_s28, 0 }
  0x68   : > { %1062 = dma.done.wait (%p1429_p7), %s245_s16, 128  }
  0x69   : > { %1064 = vsyncadd (%p1429_p7), %s245_s16, 4294967168  ;;  %p1430_p2 = scmp.ne.s32.totalorder %s1421_s26, 0 }
  0x6b   : > { %1066 = dma.done.wait (%p1430_p2), [#allocation8], 1024  }
  0x6c   : > { %1068 = vsyncadd (%p1430_p2), [#allocation8], 4294966272  ;;  %v1102_v0 = vmov 0.0|0.0   ;;  %vm1103_vm0 = vmmov 0   ;;  %v1104_v1 = vmov 0.0   ;;  %v288_v2 = vld [vmem:[#allocation9] sm:$0xff] }
  0x6d   : > { %818 = vmatprep.subr.bf16.mxu0 %v1102_v0  ;;  %794 = vmatprep.mubr.msk.f32.mxu0 %vm1103_vm0, %v1104_v1  ;;  %v289_v3 = vld [vmem:[#allocation9 + $0x8] sm:$0xff]  ;;  %v290_v4 = vld [vmem:[#allocation9 + $0x10] sm:$0xff]  ;;  %v291_v6 = vld [vmem:[#allocation9 + $0x18] sm:$0xff]  ;;  %vm299_vm1 = vcmask 261120   ;;  %vm545_vm2 = vcmask 64512   ;;  %s1105_s7 = smov 96  }
  0x6e   : > { %824 = vmatprep.subr.bf16.mxu1 %v1102_v0  ;;  %805 = vmatprep.mubr.msk.f32.mxu1 %vm1103_vm0, %v1104_v1  ;;  %v819_v5 = vpack.c.bf16 %v289_v3, %v288_v2  ;;  %v382_v7 = vld [vmem:[#allocation7] sm:$0xff]  ;;  %v383_v8 = vld [vmem:[#allocation7 + $0x8] sm:$0xff]  ;;  %v384_v9 = vld [vmem:[#allocation7 + $0x10] sm:$0xff]  ;;  %v822_v11 = vpack.c.bf16 %v291_v6, %v290_v4  ;;  %s769_s9 = sshll.u32 %s1087_s21, 7  ;;  %s282_s11 = scalar_lea.vmem [#allocation10], %s757_s25 }
  0x6f   : > { %v385_v10 = vld [vmem:[#allocation7 + $0x18] sm:$0xff]  ;;  %v825_v12 = vpack.c.bf16 %v383_v8, %v382_v7  ;;  %v761_v15 = vld [vmem:[%s1415_s4] ss:$0 sm:$0xff]  ;;  %s648_s15 = sshll.u32 %s282_s11, 4  ;;  %s1361_s10 = scalar_lea.hbm %s1416_s5, %s769_s9  ;;  %s1363_s15 = int_to_ptr.vmem [resolvable:$true] %s648_s15 }
  0x70   : > { %820 = vmatpush3.bf16.msra.mxu0 %v819_v5  ;;  %v828_v13 = vpack.c.bf16 %v385_v10, %v384_v9  ;;  %v287_v14 = vld [vmem:[%s248_s17] sm:$0xff]  ;;  %v763_v20 = vld [vmem:[%s1413_s2] ss:$0 sm:$0xff]  ;;  %s634_s21 = scalar_lea.sflag [#allocation6], %s1322_s13  ;;  %s1009_s16 = scalar_lea.vmem %s1363_s15, 128 }
  0x71   : > { %821 = vmatprep.subr.bf16.mxu0 %v1102_v0  ;;  %826 = vmatpush3.bf16.msra.mxu1 %v825_v12  ;;  %p1010_p8 = scmp.ne.s32.totalorder %s1363_s15, %s1009_s16  ;;  %p1431_p12 = scmp.ne.s32.totalorder %s1427_s8, 0 }
  0x72   : > { %827 = vmatprep.subr.bf16.mxu1 %v1102_v0  ;;  %s1106_s25 = smov [#allocation10]  }
  0x73   : > { %p1011_p1 = pnand %p1010_p8, %p1431_p12  ;;  %s1013_s17 = sshll.u32 %s1106_s25, 4  ;;  %s1014_s17 = int_to_ptr.vmem [resolvable:$false] %s1013_s17 }
  0x74   : > { %823 = vmatpush3.bf16.msra.mxu0 %v822_v11  ;;  %s1015_s26 = scalar_lea.vmem %s1014_s17, 256  ;;  %p1016_p3 = scmp.lt.s32.totalorder %s1363_s15, %s1014_s17 }
  0x75   : > { %808 = vmatprep.subr.mxu0 %v1104_v1  ;;  %829 = vmatpush3.bf16.msra.mxu1 %v828_v13  ;;  %p1012_p10 = pneg %p1011_p1  ;;  %p1017_p5 = scmp.lt.s32.totalorder %s1015_s26, %s1009_s16 }
  0x76   : > { %813 = vmatprep.subr.mxu1 %v1104_v1 }
  0x77   : > { %795 = vmatmul.mubr.msk.f32.vlgmr.msra.gmra.mrb[0].mxu0 %vm299_vm1, %v287_v14  ;;  %p1018_p9 = por %p1017_p5, %p1016_p3 }
  0x78   : > { %810 = vmatprep.mubr.msk.f32.mxu0 %vm1103_vm0, %v1104_v1  ;;  %806 = vmatmul.mubr.msk.f32.vlgmr.msra.gmra.mrb[0].mxu1 %vm299_vm1, %v287_v14 }
  0x79   : > { %815 = vmatprep.mubr.msk.f32.mxu1 %vm1103_vm0, %v1104_v1  ;;  %p1019_p11 = pnand %p1018_p9, %p1012_p10 }
 0x14a   : > { %v369_v16 = vpop.f32.mrb[0].mxu0 }
 0x14b   : > { %v370_v17 = vadd.f32 %v761_v15, %v369_v16  ;;  %v796_v18 = vpop.f32.mrb[1].mxu0  ;;  %v463_v19 = vpop.f32.mrb[0].mxu1 }
 0x14c   : > { %v807_v21 = vpop.f32.mrb[1].mxu1  ;;  %v464_v22 = vadd.f32 %v763_v20, %v463_v19 }
 0x14d   : > { %373 = vst.msk [vmem:[#allocation2] sm:$0xff] %vm299_vm1, %v370_v17 }
 0x14e   : > { %v467_v23 = vmul.f32 0.17677669, %v464_v22 }
 0x154   : > { %v468_v24 = vld [vmem:[#allocation2] sm:$0xff] }
 0x155   : > { %809 = vmatpush3.xpose.msk.msra.mxu0 %vm299_vm1, %v468_v24 }
 0x158   : > { %811 = vmatmul.mubr.msk.f32.vlgmr.msra.gmra.mrb[2].mxu0 %vm299_vm1, %v467_v23 }
 0x22b   : > { %v541_v25 = vpop.f32.mrb[2].mxu0 }
 0x22c   : > { %v812_v26 = vpop.f32.mrb[3].mxu0  ;;  %v546_v27 = vsel %vm545_vm2, %v541_v25, -inf }
 0x22d   : > { %547 = vmax.xlane.f32.xlu0 %v546_v27 }
 0x243   : > { %375 = vrot.lane.b32.xlu0 %v370_v17, %s1105_s7 }
 0x2ba   : > { %v548_v28 = vpop.xlane.xlu0 %547 }
 0x2bb   : > { %v549_v29 = vsub.f32 %v541_v25, %v548_v28 }
 0x2bd   : > { %v550_v30 = vmul.f32 1.442695, %v549_v29 }
 0x2be   : > { %v376_v31 = vpop.permute.xlu0 %375 }
 0x2bf   : > { %919 = vpow2.f32 %v550_v30  ;;  %378 = vst.msk [vmem:[#allocation3] sm:$0xff] %vm299_vm1, %v376_v31 }
 0x2c6   : > { %v555_v32 = vld [vmem:[#allocation3] sm:$0xff] }
 0x2c7   : > { %814 = vmatpush3.msra.mxu1 %v555_v32 }
 0x2c9   : > { %v920_v33 = vpop.eup %919 }
 0x2ca   : > { %816 = vmatmul.mubr.msk.f32.vlgmr.msra.gmra.mrb[2].mxu1 %vm545_vm2, %v920_v33  ;;  %v552_v34 = vsel %vm545_vm2, %v920_v33, 0.0 }
 0x2cb   : > { %553 = vadd.xlane.f32.xlu1 %v552_v34 }
 0x358   : > { %v554_v35 = vpop.xlane.xlu1 %553 }
 0x359   : > { %921 = vrcp.f32 %v554_v35 }
 0x363   : > { %v922_v36 = vpop.eup %921 }
 0x39d   : > { %v625_v37 = vpop.f32.mrb[2].mxu1 }
 0x39e   : > { %v631_v38 = vmul.f32 %v922_v36, %v625_v37  ;;  %v817_v39 = vpop.f32.mrb[3].mxu1 }
 0x3a0   : > { %632 = vst.msk [vmem:[%s282_s11] sm:$0xff] %vm299_vm1, %v631_v38 }
 0x3a1   : > { %1022 = shalt.err (!%p1019_p11)
}
 0x3a2   : > { %s1023_s13 = scalar_lea.hbm %s1361_s10, 128  ;;  %s1027_s24 = scalar_lea.hbm %s1416_s5, 256 }
 0x3a3   : > { %p1024_p0 = scmp.ne.s32.totalorder %s1361_s10, %s1023_s13  ;;  %p1028_p6 = scmp.lt.u32.totalorder %s1361_s10, %s1416_s5 }
 0x3a4   : > { %p1029_p7 = scmp.lt.u32.totalorder %s1027_s24, %s1023_s13  ;;  %p1031_p8 = scmp.lt.u32.totalorder %s1023_s13, %s1361_s10 }
 0x3a5   : > { %p1025_p4 = pnand %p1024_p0, %p1431_p12 }
 0x3a6   : > { %p1030_p2 = por %p1029_p7, %p1028_p6 }
 0x3a7   : > { %p1026_p13 = pneg %p1025_p4 }
 0x3a8   : > { %p1032_p1 = por %p1031_p8, %p1030_p2 }
 0x3aa   : > { %p1033_p10 = pnand %p1032_p1, %p1026_p13 }
 0x3ac   : > { %1036 = shalt.err (!%p1033_p10)
}
 0x3ad   : > { %840 = dma.vmem_to_hbm [thread:$0]  (%p1431_p12), %s1363_s15, 128, %s1361_s10, %s634_s21  }
 0x3ae PF: > { %s660_s11 = sand.u32 1, %s1075_s18   ;;  %p1432_p3 = scmp.ne.s32.totalorder %s1424_s29, 0 }
 0x3af   : > { %p1433_p5 = scmp.ge.s32.totalorder %s1095_s23, 2  ;;  %s661_s27 = scalar_lea.sflag [#allocation6], %s660_s11 }
 0x3b1   : > { %p854_p9 = pnand %p1433_p5, %p1432_p3 }
 0x3b3   : > { %1070 = dma.done.wait (!%p854_p9), %s661_s27, 128  }
 0x3b4   : > { %1072 = vsyncadd (!%p854_p9), %s661_s27, 4294967168  ;;  %s22_s23 = sadd.s32 1, %s1095_s23   ;;  %s1434_s18 = smov %s1079_s19 }
 0x3b5   : > { %p19_p11 = scmp.ge.s32.totalorder %s22_s23, 4   ;;  %s1435_s19 = smov %s1083_s20 }
 0x3b6   : > { %s1436_s20 = smov %s1279_s6  ;;  %s1437_s21 = smov %s1091_s22 }
 0x3b7   : > { %s1438_s22 = smov %s1440_s12  ;;  %21 = sbr.rel (!%p19_p11) target bundleno = 7 (0x7), region = 98 }
 0x3be   :  { %666 = vsyncpa [#allocation5], 1 }
 0x3bf   :  { %668 = vsyncpa [#allocation5 + $0x1], 1 }
 0x3c0   :  { %669 = vsyncpa [#allocation8], 1 }
 0x3c1   :  { %670 = vsyncpa [#allocation6], 1 }
 0x3c2   :  { %672 = vsyncpa [#allocation6 + $0x1], 1 }

</bundles_post_ra>
